<compile_context>
chip_gen: v7x
topology: tpu7x:2x2x1
jax: 0.10.0
libtpu: 0.0.40
codegen_flags: <defaults>
</compile_context>

<pallas_src>
import functools
import math
import re

import jax
import jax.numpy as jnp
from jax.experimental import pallas as pl
from jax.experimental.pallas import tpu as pltpu


def make_positional_encoding(size: int, max_len: int = 5000,
                             dtype=jnp.float32) -> jnp.ndarray:
    """Replicates PositionalEncoding.__init__ buffer `pe` (shape (max_len, size))."""
    if size % 2 != 0:
        raise ValueError(
            "Cannot use sin/cos positional encoding with odd dim (got dim={:d})".format(size)
        )
    position = jnp.arange(0, max_len, dtype=jnp.float32)[:, None]            # (max_len, 1)
    div_term = jnp.exp(
        jnp.arange(0, size, 2, dtype=jnp.float32) * -(math.log(10000.0) / size)
    )                                                                         # (size//2,)
    sin = jnp.sin(position * div_term)
    cos = jnp.cos(position * div_term)
    pe = jnp.stack([sin, cos], axis=-1).reshape(max_len, size)                # interleave sin/cos
    return pe.astype(dtype)


def _add_pe_kernel(emb_ref, pe_ref, out_ref):
    # emb_ref/out_ref: (tR, tC); pe_ref: (1, tC) or (tR, tC) -> broadcast add.
    out_ref[...] = emb_ref[...] + pe_ref[...]


def _tpu_defaults():
    """(vmem_budget_bytes, has_two_tensorcores) per detected TPU generation."""
    gen = None
    try:
        m = re.search(r"(\d+)", jax.devices()[0].device_kind)
        if m:
            gen = int(m.group(1))
    except Exception:
        gen = None
    if gen is not None and gen >= 6:
        budget = 24 * 1024 * 1024   # fits v6e/v7x 32 MiB default scoped VMEM -> ~4 MiB blocks
    else:
        budget = 12 * 1024 * 1024   # fits v5e 16 MiB default scoped VMEM -> ~2 MiB blocks
    return budget, (gen is not None and gen >= 7)


def _sublane_multiple(dtype) -> int:
    # 8 for f32/i32, 16 for bf16/f16, 32 for int8/fp8 (sub-32-bit packs along sublanes).
    return max(8, 32 // jnp.dtype(dtype).itemsize)


def _choose_fold(B, S, D, max_len, sm) -> int:
    """Pick S1 (chunk of S folded next to batch rows) for small-batch shapes.

    Valid S1 must satisfy: S1 % sm == 0 and S1 | S (dense, unmasked sublanes and
    row blocks that never straddle a sample), (S//S1)*D >= 128 (stay lane-dense),
    and max_len % (S//S1) == 0 (pe buffer reshapes zero-copy).  Returns 1 if the
    batch is already sublane-dense or no clean split exists.
    """
    if B >= sm:
        return 1
    for S1 in range(sm, S + 1, sm):
        if S % S1 != 0:
            continue
        S2 = S // S1
        if S2 * D < 128:
            break                      # larger S1 only shrinks the lane width further
        if max_len % S2 != 0:
            continue
        return S1                      # smallest valid S1 keeps the lane width largest
    return 1


@functools.partial(jax.jit, static_argnames=("block_budget_bytes",))
def positional_encoding_forward(emb: jnp.ndarray, pe: jnp.ndarray,
                                *, block_budget_bytes=None) -> jnp.ndarray:
    """emb: (B, S, D); pe: (max_len, D) constant buffer. Returns emb + pe[None, :S, :]."""
    B, S, D = emb.shape
    max_len, D_pe = pe.shape
    if D_pe != D:
        raise ValueError("pe feature dim does not match emb")
    if S > max_len:
        raise ValueError("sequence length exceeds positional-encoding max_len")
    if pe.dtype != emb.dtype:
        # One-time cast. NOTE: PyTorch promotes (emb + f32 pe); for bf16 emb this
        # kernel instead adds in bf16 (lower-precision positional term, bf16 output).
        pe = pe.astype(emb.dtype)

    itemsize = jnp.dtype(emb.dtype).itemsize
    sm = _sublane_multiple(emb.dtype)
    budget, two_tc = _tpu_defaults()
    if block_budget_bytes is not None:
        budget = int(block_budget_bytes)

    S1 = _choose_fold(B, S, D, max_len, sm)
    if S1 > 1:
        # Fold path: rows = B*S1 (sublane-dense), cols = (S//S1)*D (lane-dense).
        S2 = S // S1
        cols, nrows = S2 * D, B * S1
        tR = S1                                  # one full sample per row block
        pe_rows = S1                             # pe block already sublane-aligned
        pe_pad_rows = S1
        emb2d = emb.reshape(nrows, cols)
        pe2d = pe.reshape(max_len // S2, cols)   # zero-copy view of the constant buffer
    else:
        # Classic path: rows = B, cols = S*D.
        cols, nrows = S * D, B
        tR = min(B - (B % sm), 64) if B >= sm else B
        pe_rows = 1
        pe_pad_rows = sm                         # a (1,tC) VMEM buffer pads to a sublane group
        emb2d = emb.reshape(nrows, cols)
        if cols >= 128:
            # Full flattened pe: window [c*tC, c*tC+tC) of this row equals
            # pe[:S].reshape(-1)[...] for every in-bounds output column; the tail of a
            # partial last column tile reads positions >= S but those writes are masked.
            pe2d = pe.reshape(1, max_len * D)
        else:
            pe2d = pe[:S, :].reshape(1, cols)    # tiny lane-sparse fallback

    # Column tile: biggest multiple of 128 whose double-buffered in + out + padded-pe
    # footprint fits the per-generation VMEM budget.
    if cols < 128:
        tC = cols
    else:
        per_col = itemsize * (4 * tR + 2 * pe_pad_rows)
        tC = max(128, (budget // per_col) // 128 * 128)
        tC = min(tC, (cols // 128) * 128)

    col_tiles = pl.cdiv(cols, tC)
    row_tiles = pl.cdiv(nrows, tR)

    # v7x has 2 TensorCores: guarantee >= 2 parallel blocks when the shape allows it.
    if two_tc and col_tiles * row_tiles < 2:
        if tC >= 256:
            tC = (tC // 2) // 128 * 128
            col_tiles = pl.cdiv(cols, tC)
        elif S1 == 1 and tR >= 2 * sm:
            tR = max(sm, (tR // 2) // sm * sm)
            row_tiles = pl.cdiv(nrows, tR)
        # else: too small to split cleanly; a single block is fine.

    cost = pl.CostEstimate(
        flops=B * S * D,
        transcendentals=0,
        bytes_accessed=(2 * B * S * D + S * D) * itemsize,
    )

    out2d = pl.pallas_call(
        _add_pe_kernel,
        out_shape=jax.ShapeDtypeStruct((nrows, cols), emb.dtype),
        grid_spec=pltpu.PrefetchScalarGridSpec(
            num_scalar_prefetch=0,
            # Columns OUTER, rows INNER: the pe block index is independent of the row
            # axis, so each pe tile is DMA'd once per column tile and reused across rows.
            grid=(col_tiles, row_tiles),
            in_specs=[
                pl.BlockSpec((tR, tC), lambda c, r: (r, c)),
                pl.BlockSpec((pe_rows, tC), lambda c, r: (0, c)),
            ],
            out_specs=pl.BlockSpec((tR, tC), lambda c, r: (r, c)),
        ),
        compiler_params=pltpu.CompilerParams(
            dimension_semantics=("parallel", "parallel"),
        ),
        input_output_aliases={0: 0},   # in-place add: output reuses emb's HBM buffer
        cost_estimate=cost,
    )(emb2d, pe2d)

    return out2d.reshape(B, S, D)


if __name__ == "__main__":
    MAX_LEN = 64  # small max_len for the tests; only the first S rows are ever used

    key = jax.random.PRNGKey(0)
    k1, k2, k3, k4 = jax.random.split(key, 4)

    # 1) Primary small shape (classic lane-dense path): (batch, seq, hidden) = (2, 8, 32).
    B, S, D = 2, 8, 32
    emb = jax.random.normal(k1, (B, S, D), dtype=jnp.float32)
    pe = make_positional_encoding(size=D, max_len=MAX_LEN)
    out = jax.block_until_ready(positional_encoding_forward(emb, pe))
    ref = emb + pe[None, :S, :]           # mirrors: return emb + self.pe[:, :emb.size(1)]
    assert out.shape == (B, S, D)
    assert jnp.allclose(out, ref, atol=1e-6), "mismatch (classic path, D=32)"

    # 2) Small-batch fold path: B=2 < 8, S folded so sublanes are dense.
    B2, S2_, D2 = 2, 16, 128
    emb2 = jax.random.normal(k2, (B2, S2_, D2), dtype=jnp.float32)
    pe2 = make_positional_encoding(size=D2, max_len=MAX_LEN)
    out2 = jax.block_until_ready(positional_encoding_forward(emb2, pe2))
    ref2 = emb2 + pe2[None, :S2_, :]
    assert jnp.allclose(out2, ref2, atol=1e-6), "mismatch (fold path, D=128)"

    # 3) Multi-tile grid with partial tiles on BOTH axes and flattened-pe windowing past S
    #    (small forced block budget so this small array still tiles: grid = (6, 2)).
    B3, S3, D3 = 10, 7, 96
    emb3 = jax.random.normal(k3, (B3, S3, D3), dtype=jnp.float32)
    pe3 = make_positional_encoding(size=D3, max_len=MAX_LEN)
    out3 = jax.block_until_ready(
        positional_encoding_forward(emb3, pe3, block_budget_bytes=32 * 1024))
    ref3 = emb3 + pe3[None, :S3, :]
    assert jnp.allclose(out3, ref3, atol=1e-6), "mismatch (tiled path with partial tiles)"

    # 4) bf16: exercises the 16-row sublane-packing (fold) path.
    B4, S4, D4 = 2, 32, 128
    emb4 = jax.random.normal(k4, (B4, S4, D4), dtype=jnp.float32).astype(jnp.bfloat16)
    pe4 = make_positional_encoding(size=D4, max_len=MAX_LEN, dtype=jnp.bfloat16)
    out4 = jax.block_until_ready(positional_encoding_forward(emb4, pe4))
    ref4 = emb4 + pe4[None, :S4, :]
    assert jnp.allclose(out4.astype(jnp.float32), ref4.astype(jnp.float32), atol=1e-2), \
        "mismatch (bf16 fold path)"

    print("KERNEL_OK")
</pallas_src>

<mosaic_0001>
module attributes {stable_mosaic.version = 11 : i64} {
  func.func @_add_pe_kernel(%arg0: i32, %arg1: i32, %arg2: memref<2x256xf32, #tpu.memory_space<vmem>>, %arg3: memref<1x256xf32, #tpu.memory_space<vmem>>, %arg4: memref<2x256xf32, #tpu.memory_space<vmem>>) attributes {dimension_semantics = [#tpu.dimension_semantics<parallel>, #tpu.dimension_semantics<parallel>], iteration_bounds = array<i64: 1, 1>, scalar_prefetch = 0 : i64, scratch_operands = 0 : i64, tpu.core_type = #tpu.core_type<tc>, window_params = [{transform_indices = @transform_0, window_bounds = array<i64: 2, 256>}, {transform_indices = @transform_1, window_bounds = array<i64: 1, 256>}, {transform_indices = @transform_2, window_bounds = array<i64: 2, 256>}]} {
    %c0 = arith.constant 0 : index
    %c0_0 = arith.constant 0 : index
    %0 = vector.load %arg2[%c0, %c0_0] : memref<2x256xf32, #tpu.memory_space<vmem>>, vector<2x256xf32>
    %c0_1 = arith.constant 0 : index
    %c0_2 = arith.constant 0 : index
    %1 = vector.load %arg3[%c0_1, %c0_2] : memref<1x256xf32, #tpu.memory_space<vmem>>, vector<1x256xf32>
    %2 = vector.broadcast %1 : vector<1x256xf32> to vector<2x256xf32>
    %3 = arith.addf %0, %2 : vector<2x256xf32>
    %c0_3 = arith.constant 0 : index
    %c0_4 = arith.constant 0 : index
    %4 = vector.load %arg4[%c0_3, %c0_4] : memref<2x256xf32, #tpu.memory_space<vmem>>, vector<2x256xf32>
    tpu.vector_store %arg4[%c0_3, %c0_4], %3 {strides = array<i32>} : memref<2x256xf32, #tpu.memory_space<vmem>>, vector<2x256xf32>,
    return
  }
  func.func @transform_0(%arg0: i32, %arg1: i32) -> (i32, i32) {
    %c0_i32 = arith.constant 0 : i32
    return %arg1, %arg0 : i32, i32
  }
  func.func @transform_1(%arg0: i32, %arg1: i32) -> (i32, i32) {
    %c0_i32 = arith.constant 0 : i32
    %c0_i32_0 = arith.constant 0 : i32
    return %c0_i32, %arg0 : i32, i32
  }
  func.func @transform_2(%arg0: i32, %arg1: i32) -> (i32, i32) {
    %c0_i32 = arith.constant 0 : i32
    return %arg1, %arg0 : i32, i32
  }
}

</mosaic_0001>

<bundles_post_ra>
// kernel: positional_encoding_forward.1
= control target key start
LH: loop header
LB: loop body
LE: loop exit
PB: predicated region body
PF: predicated region fallthrough
CT: control target
= control target key end

     0   :  { %v14_v0 = vlaneseq  ;;  %v38_v1 = vmov 1983009808   ;;  %s63_s1 = inlined_call_operand.vmem [shape: f32[1,2048], index: 1, kind: input, shape index: {}]   ;;  %s64_s0 = inlined_call_operand.vmem [shape: f32[2,256], index: 0, kind: input, shape index: {}, may-alias: {0,2}]   ;;  %s65_s2 = inlined_call_operand.vmem [shape: f32[2,256], index: 2, kind: output, shape index: {}, may-alias: {0,2}]  }
   0x1   :  { %v24_v2 = vunpack.c.l.s4 %v38_v1  ;;  %v12_v4 = vld [vmem:[%s63_s1] sm:$0x3] }
   0x2   :  { %v15_v3 = vshrl.u32 %v14_v0, 7  ;;  %v11_v12 = vld [vmem:[%s64_s0] sm:$0xf] }
   0x3   :  { %v25_v5 = vunpack.c.0.s8 %v24_v2 }
   0x4   :  { %v16_v6 = vsub.s32 0, %v15_v3  ;;  %v20_v7 = vsub.s32 1, %v15_v3 }
   0x5   :  { %v28_v10 = vsub.s32 %v25_v5, %v15_v3 }
   0x6   :  { %v17_v8 = vrot.slane %v12_v4, %v16_v6  ;;  %v21_v9 = vrot.slane %v12_v4, %v20_v7 }
   0x8   :  { %v22_v11 = vcombine.low %v17_v8, %v21_v9 }
   0xa   :  { %v29_v13 = vrot.slane %v22_v11, %v28_v10 }
   0xc   :  { %v31_v14 = vadd.f32 %v29_v13, %v11_v12 }
   0xe   :  { %32 = vst [vmem:[%s65_s2] sm:$0xf] %v31_v14 }

</bundles_post_ra>
